<compile_context>
chip_gen: v5e
topology: v5e:2x2
jax: 0.10.0
libtpu: 0.0.40
codegen_flags: <defaults>
</compile_context>

<pallas_src>
import functools

import jax
import jax.numpy as jnp
from jax.experimental import pallas as pl
from jax.experimental.pallas import tpu as pltpu

WINDOW = 11
SIGMA = 1.5
C1 = 0.01 ** 2
C2 = 0.03 ** 2


def _gaussian_1d(window_size=WINDOW, sigma=SIGMA):
    xs = jnp.arange(window_size, dtype=jnp.float32) - window_size // 2
    g = jnp.exp(-(xs ** 2) / (2.0 * sigma ** 2))
    return g / jnp.sum(g)


def _conv_matrix(size, kern):
    # M[i, k] = kern[k - i + pad] for valid offsets, else 0 (zero 'same' padding)
    ws = kern.shape[0]
    pad = ws // 2
    i = jnp.arange(size)[:, None]
    k = jnp.arange(size)[None, :]
    idx = k - i + pad
    valid = (idx >= 0) & (idx < ws)
    return jnp.where(valid, kern[jnp.clip(idx, 0, ws - 1)], 0.0).astype(jnp.float32)


def _choose_lane_block(n_slices, w):
    """Lane-block width: whole slices, multiple of 128 if tiled, capped size."""
    nw = n_slices * w
    cap = 1024  # keeps the block-diag GwT matrix <= 4 MiB f32
    if nw <= cap:
        return nw
    best = None
    for tn in range(1, n_slices + 1):
        lblk = tn * w
        if lblk > cap:
            break
        if nw % lblk == 0 and lblk % 128 == 0:
            best = lblk
    return best if best is not None else nw


def _ssim_l1_kernel(out_ref, tgt_ref, gh_ref, gwt_ref, part_ref):
    """One lane-block: L1 partial + SSIM-map partial (both sublane-reduced)."""
    x = out_ref[...].astype(jnp.float32)   # (H, LBLK)  "output" (img1)
    y = tgt_ref[...].astype(jnp.float32)   # (H, LBLK)  "target" (img2)
    h = x.shape[0]

    # ---- L1 partial: reduce over sublanes only (lane reduce done in wrapper)
    l1_vec = jnp.sum(jnp.abs(x - y), axis=0, keepdims=True)          # (1, LBLK)

    # ---- all 5 blur operands stacked along sublanes -> 1 big MXU matmul (W),
    #      then 5 small MXU matmuls (H).
    z = jnp.concatenate([x, y, x * x, y * y, x * y], axis=0)         # (5H, LBLK)
    t = jnp.dot(z, gwt_ref[...], preferred_element_type=jnp.float32)  # blur along W

    gh = gh_ref[...]                                                  # (H, H)
    mu1 = jnp.dot(gh, t[0:h], preferred_element_type=jnp.float32)
    mu2 = jnp.dot(gh, t[h:2 * h], preferred_element_type=jnp.float32)
    e_x2 = jnp.dot(gh, t[2 * h:3 * h], preferred_element_type=jnp.float32)
    e_y2 = jnp.dot(gh, t[3 * h:4 * h], preferred_element_type=jnp.float32)
    e_xy = jnp.dot(gh, t[4 * h:5 * h], preferred_element_type=jnp.float32)

    mu1_sq = mu1 * mu1
    mu2_sq = mu2 * mu2
    mu1_mu2 = mu1 * mu2
    sigma1_sq = e_x2 - mu1_sq
    sigma2_sq = e_y2 - mu2_sq
    sigma12 = e_xy - mu1_mu2

    num = (2.0 * mu1_mu2 + C1) * (2.0 * sigma12 + C2)
    den = (mu1_sq + mu2_sq + C1) * (sigma1_sq + sigma2_sq + C2)
    ssim_map = num * pl.reciprocal(den)

    ssim_vec = jnp.sum(ssim_map, axis=0, keepdims=True)              # (1, LBLK)

    part_ref[...] = jnp.concatenate([l1_vec, ssim_vec], axis=0)      # (2, LBLK)


@functools.partial(jax.jit, static_argnames=("lambda_l1", "lambda_ssim"))
def _loss_group_jit(target, output, lambda_l1, lambda_ssim):
    b_, c_, h, w = target.shape
    n = b_ * c_
    nw = n * w

    # layout plumbing: (B,C,H,W) -> (H, N*W); keep native dtype (no HBM f32 copy)
    def to_lane_major(img):
        return jnp.transpose(img, (2, 0, 1, 3)).reshape(h, nw)

    out2d = to_lane_major(output)
    tgt2d = to_lane_major(target)

    lblk = _choose_lane_block(n, w)
    grid_n = nw // lblk
    tn = lblk // w

    # Toeplitz blur matrices (zero 'same' padding); W-blur in block-diag batched
    # form so one matmul blurs every channel slice in the lane block at once.
    g1d = _gaussian_1d()
    gh = _conv_matrix(h, g1d)                                    # (H, H)
    gwt = _conv_matrix(w, g1d).T                                 # (W, W)
    gwt_big = jnp.kron(jnp.eye(tn, dtype=jnp.float32), gwt)      # (LBLK, LBLK)

    itemsize = jnp.dtype(target.dtype).itemsize
    flops_per_block = (2 * (5 * h) * lblk * lblk          # W-blur matmul
                       + 5 * 2 * h * h * lblk             # H-blur matmuls
                       + 30 * h * lblk)                   # elementwise SSIM math
    cost = pl.CostEstimate(
        flops=int(grid_n * flops_per_block),
        transcendentals=int(grid_n * h * lblk),
        bytes_accessed=int(2 * n * h * w * itemsize
                           + 4 * (h * h + lblk * lblk + grid_n * 2 * lblk)),
    )

    partials = pl.pallas_call(
        _ssim_l1_kernel,
        out_shape=jax.ShapeDtypeStruct((grid_n, 2, lblk), jnp.float32),
        grid_spec=pltpu.PrefetchScalarGridSpec(
            num_scalar_prefetch=0,
            grid=(grid_n,),
            in_specs=[
                pl.BlockSpec((h, lblk), lambda g: (0, g)),          # output image
                pl.BlockSpec((h, lblk), lambda g: (0, g)),          # target image
                pl.BlockSpec((h, h), lambda g: (0, 0)),             # Gh (H-blur)
                pl.BlockSpec((lblk, lblk), lambda g: (0, 0)),       # block-diag GwT
            ],
            out_specs=pl.BlockSpec((None, 2, lblk), lambda g: (g, 0, 0)),
        ),
        compiler_params=pltpu.CompilerParams(
            dimension_semantics=("parallel",)),
        cost_estimate=cost,
    )(out2d, tgt2d, gh, gwt_big)

    sums = jnp.sum(partials, axis=(0, 2))                 # (2,): [l1_sum, ssim_sum]
    denom = jnp.float32(n * h * w)
    l1_loss = sums[0] / denom
    ssim_loss = 1.0 - sums[1] / denom
    total = lambda_l1 * l1_loss + lambda_ssim * ssim_loss
    return total, l1_loss, ssim_loss


def loss_group_forward(target, output, lambda_l1=0.8, lambda_ssim=0.2):
    """Equivalent of LossGroup.forward(target, output). Returns (loss, loss_dict)."""
    total, l1_loss, ssim_loss = _loss_group_jit(
        target, output, lambda_l1=float(lambda_l1), lambda_ssim=float(lambda_ssim))
    # mirrors the PyTorch .item() host transfers (forces a host sync)
    loss_dict = {"l1": float(l1_loss), "ssim": float(ssim_loss), "total": float(total)}
    return total, loss_dict


if __name__ == "__main__":
    key = jax.random.PRNGKey(0)
    k1, k2 = jax.random.split(key)
    B, C, H, W = 2, 4, 16, 16   # NCHW; N*W = 128 lanes -> one lane-dense block
    target = jax.random.uniform(k1, (B, C, H, W), dtype=jnp.float32)
    output = jnp.clip(
        target + 0.05 * jax.random.normal(k2, (B, C, H, W), dtype=jnp.float32),
        0.0, 1.0)

    lambda_l1, lambda_ssim = 0.8, 0.2
    loss, loss_dict = loss_group_forward(target, output, lambda_l1, lambda_ssim)
    jax.block_until_ready(loss)
    print("KERNEL_OK")
</pallas_src>

<mosaic_0001>
module attributes {stable_mosaic.version = 11 : i64} {
  func.func @_ssim_l1_kernel(%arg0: i32, %arg1: memref<16x128xf32, #tpu.memory_space<vmem>>, %arg2: memref<16x128xf32, #tpu.memory_space<vmem>>, %arg3: memref<16x16xf32, #tpu.memory_space<vmem>>, %arg4: memref<128x128xf32, #tpu.memory_space<vmem>>, %arg5: memref<1x2x128xf32, #tpu.memory_space<vmem>>) attributes {dimension_semantics = [#tpu.dimension_semantics<parallel>], iteration_bounds = array<i64: 1>, scalar_prefetch = 0 : i64, scratch_operands = 0 : i64, tpu.core_type = #tpu.core_type<tc>, window_params = [{transform_indices = @transform_0, window_bounds = array<i64: 16, 128>}, {transform_indices = @transform_1, window_bounds = array<i64: 16, 128>}, {pipeline_mode = #tpu.pipeline_mode<synchronous>, transform_indices = @transform_2, window_bounds = array<i64: 16, 16>}, {pipeline_mode = #tpu.pipeline_mode<synchronous>, transform_indices = @transform_3, window_bounds = array<i64: 128, 128>}, {transform_indices = @transform_4, window_bounds = array<i64: 1, 2, 128>}]} {
    %c0 = arith.constant 0 : index
    %c0_0 = arith.constant 0 : index
    %0 = vector.load %arg1[%c0, %c0_0] : memref<16x128xf32, #tpu.memory_space<vmem>>, vector<16x128xf32>
    %c0_1 = arith.constant 0 : index
    %c0_2 = arith.constant 0 : index
    %1 = vector.load %arg2[%c0_1, %c0_2] : memref<16x128xf32, #tpu.memory_space<vmem>>, vector<16x128xf32>
    %2 = arith.subf %0, %1 : vector<16x128xf32>
    %3 = math.absf %2 : vector<16x128xf32>
    %cst = arith.constant dense<0.000000e+00> : vector<128xf32>
    %4 = vector.multi_reduction <add>, %3, %cst [0] : vector<16x128xf32> to vector<128xf32>
    %5 = vector.shape_cast %4 : vector<128xf32> to vector<1x128xf32>
    %6 = arith.mulf %0, %0 : vector<16x128xf32>
    %7 = arith.mulf %1, %1 : vector<16x128xf32>
    %8 = arith.mulf %0, %1 : vector<16x128xf32>
    %9 = tpu.concatenate %0, %1, %6, %7, %8 in 0 : vector<16x128xf32>, vector<16x128xf32>, vector<16x128xf32>, vector<16x128xf32>, vector<16x128xf32> -> vector<80x128xf32>
    %c0_3 = arith.constant 0 : index
    %c0_4 = arith.constant 0 : index
    %10 = vector.load %arg4[%c0_3, %c0_4] : memref<128x128xf32, #tpu.memory_space<vmem>>, vector<128x128xf32>
    %cst_5 = arith.constant dense<0.000000e+00> : vector<80x128xf32>
    %11 = tpu.matmul %9, %10, %cst_5 {dimension_numbers = #tpu.dot_dimension_numbers<[1], [0], [0], [1], [0, 0, 1, 1], [], []>} : vector<80x128xf32>, vector<128x128xf32>, vector<80x128xf32> -> vector<80x128xf32>
    %c0_6 = arith.constant 0 : index
    %c0_7 = arith.constant 0 : index
    %12 = vector.load %arg3[%c0_6, %c0_7] : memref<16x16xf32, #tpu.memory_space<vmem>>, vector<16x16xf32>
    %13 = vector.extract_strided_slice %11 {offsets = [0, 0], sizes = [16, 128], strides = [1, 1]} : vector<80x128xf32> to vector<16x128xf32>
    %cst_8 = arith.constant dense<0.000000e+00> : vector<16x128xf32>
    %14 = tpu.matmul %12, %13, %cst_8 {dimension_numbers = #tpu.dot_dimension_numbers<[1], [0], [0], [1], [0, 0, 1, 1], [], []>} : vector<16x16xf32>, vector<16x128xf32>, vector<16x128xf32> -> vector<16x128xf32>
    %15 = vector.extract_strided_slice %11 {offsets = [16, 0], sizes = [16, 128], strides = [1, 1]} : vector<80x128xf32> to vector<16x128xf32>
    %cst_9 = arith.constant dense<0.000000e+00> : vector<16x128xf32>
    %16 = tpu.matmul %12, %15, %cst_9 {dimension_numbers = #tpu.dot_dimension_numbers<[1], [0], [0], [1], [0, 0, 1, 1], [], []>} : vector<16x16xf32>, vector<16x128xf32>, vector<16x128xf32> -> vector<16x128xf32>
    %17 = vector.extract_strided_slice %11 {offsets = [32, 0], sizes = [16, 128], strides = [1, 1]} : vector<80x128xf32> to vector<16x128xf32>
    %cst_10 = arith.constant dense<0.000000e+00> : vector<16x128xf32>
    %18 = tpu.matmul %12, %17, %cst_10 {dimension_numbers = #tpu.dot_dimension_numbers<[1], [0], [0], [1], [0, 0, 1, 1], [], []>} : vector<16x16xf32>, vector<16x128xf32>, vector<16x128xf32> -> vector<16x128xf32>
    %19 = vector.extract_strided_slice %11 {offsets = [48, 0], sizes = [16, 128], strides = [1, 1]} : vector<80x128xf32> to vector<16x128xf32>
    %cst_11 = arith.constant dense<0.000000e+00> : vector<16x128xf32>
    %20 = tpu.matmul %12, %19, %cst_11 {dimension_numbers = #tpu.dot_dimension_numbers<[1], [0], [0], [1], [0, 0, 1, 1], [], []>} : vector<16x16xf32>, vector<16x128xf32>, vector<16x128xf32> -> vector<16x128xf32>
    %21 = vector.extract_strided_slice %11 {offsets = [64, 0], sizes = [16, 128], strides = [1, 1]} : vector<80x128xf32> to vector<16x128xf32>
    %cst_12 = arith.constant dense<0.000000e+00> : vector<16x128xf32>
    %22 = tpu.matmul %12, %21, %cst_12 {dimension_numbers = #tpu.dot_dimension_numbers<[1], [0], [0], [1], [0, 0, 1, 1], [], []>} : vector<16x16xf32>, vector<16x128xf32>, vector<16x128xf32> -> vector<16x128xf32>
    %23 = arith.mulf %14, %14 : vector<16x128xf32>
    %24 = arith.mulf %16, %16 : vector<16x128xf32>
    %25 = arith.mulf %14, %16 : vector<16x128xf32>
    %26 = arith.subf %18, %23 : vector<16x128xf32>
    %27 = arith.subf %20, %24 : vector<16x128xf32>
    %28 = arith.subf %22, %25 : vector<16x128xf32>
    %cst_13 = arith.constant 2.000000e+00 : f32
    %29 = vector.broadcast %cst_13 : f32 to vector<16x128xf32>
    %30 = arith.mulf %29, %25 : vector<16x128xf32>
    %cst_14 = arith.constant 9.99999974E-5 : f32
    %31 = vector.broadcast %cst_14 : f32 to vector<16x128xf32>
    %32 = arith.addf %30, %31 : vector<16x128xf32>
    %cst_15 = arith.constant 2.000000e+00 : f32
    %33 = vector.broadcast %cst_15 : f32 to vector<16x128xf32>
    %34 = arith.mulf %33, %28 : vector<16x128xf32>
    %cst_16 = arith.constant 8.99999984E-4 : f32
    %35 = vector.broadcast %cst_16 : f32 to vector<16x128xf32>
    %36 = arith.addf %34, %35 : vector<16x128xf32>
    %37 = arith.mulf %32, %36 : vector<16x128xf32>
    %38 = arith.addf %23, %24 : vector<16x128xf32>
    %cst_17 = arith.constant 9.99999974E-5 : f32
    %39 = vector.broadcast %cst_17 : f32 to vector<16x128xf32>
    %40 = arith.addf %38, %39 : vector<16x128xf32>
    %41 = arith.addf %26, %27 : vector<16x128xf32>
    %cst_18 = arith.constant 8.99999984E-4 : f32
    %42 = vector.broadcast %cst_18 : f32 to vector<16x128xf32>
    %43 = arith.addf %41, %42 : vector<16x128xf32>
    %44 = arith.mulf %40, %43 : vector<16x128xf32>
    %45 = tpu.reciprocal %44 : vector<16x128xf32> -> vector<16x128xf32>
    %46 = arith.mulf %37, %45 : vector<16x128xf32>
    %cst_19 = arith.constant dense<0.000000e+00> : vector<128xf32>
    %47 = vector.multi_reduction <add>, %46, %cst_19 [0] : vector<16x128xf32> to vector<128xf32>
    %48 = vector.shape_cast %47 : vector<128xf32> to vector<1x128xf32>
    %49 = tpu.concatenate %5, %48 in 0 : vector<1x128xf32>, vector<1x128xf32> -> vector<2x128xf32>
    %c0_20 = arith.constant 0 : index
    %c0_21 = arith.constant 0 : index
    %c0_22 = arith.constant 0 : index
    %50 = vector.load %arg5[%c0_20, %c0_21, %c0_22] : memref<1x2x128xf32, #tpu.memory_space<vmem>>, vector<1x2x128xf32>
    %51 = vector.shape_cast %50 : vector<1x2x128xf32> to vector<2x128xf32>
    %52 = vector.shape_cast %49 : vector<2x128xf32> to vector<1x2x128xf32>
    tpu.vector_store %arg5[%c0_20, %c0_21, %c0_22], %52 {strides = array<i32>} : memref<1x2x128xf32, #tpu.memory_space<vmem>>, vector<1x2x128xf32>,
    return
  }
  func.func @transform_0(%arg0: i32) -> (i32, i32) {
    %c0_i32 = arith.constant 0 : i32
    %c0_i32_0 = arith.constant 0 : i32
    return %c0_i32, %arg0 : i32, i32
  }
  func.func @transform_1(%arg0: i32) -> (i32, i32) {
    %c0_i32 = arith.constant 0 : i32
    %c0_i32_0 = arith.constant 0 : i32
    return %c0_i32, %arg0 : i32, i32
  }
  func.func @transform_2(%arg0: i32) -> (i32, i32) {
    %c0_i32 = arith.constant 0 : i32
    %c0_i32_0 = arith.constant 0 : i32
    %c0_i32_1 = arith.constant 0 : i32
    return %c0_i32, %c0_i32_0 : i32, i32
  }
  func.func @transform_3(%arg0: i32) -> (i32, i32) {
    %c0_i32 = arith.constant 0 : i32
    %c0_i32_0 = arith.constant 0 : i32
    %c0_i32_1 = arith.constant 0 : i32
    return %c0_i32, %c0_i32_0 : i32, i32
  }
  func.func @transform_4(%arg0: i32) -> (i32, i32, i32) {
    %c0_i32 = arith.constant 0 : i32
    %c0_i32_0 = arith.constant 0 : i32
    %c0_i32_1 = arith.constant 0 : i32
    return %arg0, %c0_i32, %c0_i32_0 : i32, i32, i32
  }
}

</mosaic_0001>

<bundles_post_ra>
// kernel: _loss_group_jit.1
= control target key start
LH: loop header
LB: loop body
LE: loop exit
PB: predicated region body
PF: predicated region fallthrough
CT: control target
= control target key end

     0   :  { %vm103_vm0 = vcmask 130048   ;;  %vm294_vm9 = vcmask 1040384   ;;  %s471_s3 = inlined_call_operand.vmem [shape: f32[128,128], index: 3, kind: input, shape index: {}]   ;;  %s472_s1 = inlined_call_operand.vmem [shape: f32[16,128], index: 1, kind: input, shape index: {}]   ;;  %s473_s0 = inlined_call_operand.vmem [shape: f32[16,128], index: 0, kind: input, shape index: {}]   ;;  %s474_s2 = inlined_call_operand.vmem [shape: f32[16,16], index: 2, kind: input, shape index: {}]   ;;  %s475_s4 = inlined_call_operand.vmem [shape: f32[1,2,128], index: 4, kind: output, shape index: {}]  }
   0x1   :  { %v53_v0 = vld [vmem:[%s471_s3 + $0x78] sm:$0xff]  ;;  %v52_v1 = vld [vmem:[%s471_s3 + $0x70] sm:$0xff]  ;;  %v51_v2 = vld [vmem:[%s471_s3 + $0x68] sm:$0xff] }
   0x2   :  { %54 = vmatpush.msra.mxu0 %v53_v0  ;;  %312 = vmatpush.msra.mxu3 %v53_v0  ;;  %v50_v3 = vld [vmem:[%s471_s3 + $0x60] sm:$0xff]  ;;  %v49_v4 = vld [vmem:[%s471_s3 + $0x58] sm:$0xff]  ;;  %v48_v7 = vld [vmem:[%s471_s3 + $0x50] sm:$0xff] }
   0x3   :  { %311 = vmatpush.msra.mxu2 %v53_v0  ;;  %v392_v5 = vld [vmem:[%s473_s0] sm:$0xff]  ;;  %v47_v9 = vld [vmem:[%s471_s3 + $0x48] sm:$0xff]  ;;  %v45_v11 = vld [vmem:[%s471_s3 + $0x38] sm:$0xff] }
   0x4   :  { %55 = vmatpush.msra.mxu0 %v52_v1  ;;  %314 = vmatpush.msra.mxu3 %v52_v1  ;;  %v397_v6 = vld [vmem:[%s472_s1] sm:$0xff]  ;;  %v18_v12 = vld [vmem:[%s473_s0 + $0x8] sm:$0xff]  ;;  %v44_v14 = vld [vmem:[%s471_s3 + $0x30] sm:$0xff]  ;;  %v32_v26 = vmul.f32 %v392_v5, %v392_v5 }
   0x5   :  { %313 = vmatpush.msra.mxu2 %v52_v1  ;;  %v21_v8 = vsub.f32 %v392_v5, %v397_v6  ;;  %v46_v10 = vld [vmem:[%s471_s3 + $0x40] sm:$0xff]  ;;  %v20_v13 = vld [vmem:[%s472_s1 + $0x8] sm:$0xff]  ;;  %v41_v21 = vld [vmem:[%s471_s3 + $0x18] sm:$0xff]  ;;  %v33_v25 = vmul.f32 %v18_v12, %v18_v12  ;;  %v34_v27 = vmul.f32 %v397_v6, %v397_v6  ;;  %v36_v29 = vmul.f32 %v397_v6, %v392_v5 }
   0x6   :  { %56 = vmatpush.msra.mxu0 %v51_v2  ;;  %316 = vmatpush.msra.mxu3 %v51_v2  ;;  %v22_v16 = vsub.f32 %v18_v12, %v20_v13  ;;  %v43_v17 = vld [vmem:[%s471_s3 + $0x28] sm:$0xff]  ;;  %v42_v19 = vld [vmem:[%s471_s3 + $0x20] sm:$0xff]  ;;  %v40_v22 = vld [vmem:[%s471_s3 + $0x10] sm:$0xff]  ;;  %v35_v28 = vmul.f32 %v20_v13, %v20_v13  ;;  %v37_v30 = vmul.f32 %v20_v13, %v18_v12 }
   0x7   :  { %315 = vmatpush.msra.mxu2 %v51_v2  ;;  %v23_v15 = vand.u32 2147483647, %v21_v8  ;;  %v39_v23 = vld [vmem:[%s471_s3 + $0x8] sm:$0xff]  ;;  %v38_v24 = vld [vmem:[%s471_s3] sm:$0xff] }
   0x8   :  { %57 = vmatpush.msra.mxu0 %v50_v3  ;;  %318 = vmatpush.msra.mxu3 %v50_v3  ;;  %v24_v18 = vand.u32 2147483647, %v22_v16  ;;  %v101_v34 = vld [vmem:[%s474_s2] sm:$0xff]  ;;  %v102_v37 = vld [vmem:[%s474_s2 + $0x8] sm:$0xff] }
   0x9   :  { %317 = vmatpush.msra.mxu2 %v50_v3 }
   0xa   :  { %58 = vmatpush.msra.mxu0 %v49_v4  ;;  %320 = vmatpush.msra.mxu3 %v49_v4  ;;  %v428_v20 = vadd.f32 %v24_v18, %v23_v15 }
   0xb   :  { %319 = vmatpush.msra.mxu2 %v49_v4 }
   0xc   :  { %59 = vmatpush.msra.mxu0 %v48_v7  ;;  %322 = vmatpush.msra.mxu3 %v48_v7 }
   0xd   :  { %321 = vmatpush.msra.mxu2 %v48_v7 }
   0xe   :  { %60 = vmatpush.msra.mxu0 %v47_v9  ;;  %324 = vmatpush.msra.mxu3 %v47_v9 }
   0xf   :  { %323 = vmatpush.msra.mxu2 %v47_v9 }
  0x10   :  { %61 = vmatpush.msra.mxu0 %v46_v10  ;;  %326 = vmatpush.msra.mxu3 %v46_v10 }
  0x11   :  { %325 = vmatpush.msra.mxu2 %v46_v10 }
  0x12   :  { %62 = vmatpush.msra.mxu0 %v45_v11  ;;  %328 = vmatpush.msra.mxu3 %v45_v11 }
  0x13   :  { %327 = vmatpush.msra.mxu2 %v45_v11 }
  0x14   :  { %63 = vmatpush.msra.mxu0 %v44_v14  ;;  %330 = vmatpush.msra.mxu3 %v44_v14 }
  0x15   :  { %329 = vmatpush.msra.mxu2 %v44_v14 }
  0x16   :  { %64 = vmatpush.msra.mxu0 %v43_v17  ;;  %332 = vmatpush.msra.mxu3 %v43_v17 }
  0x17   :  { %331 = vmatpush.msra.mxu2 %v43_v17 }
  0x18   :  { %65 = vmatpush.msra.mxu0 %v42_v19  ;;  %334 = vmatpush.msra.mxu3 %v42_v19 }
  0x19   :  { %333 = vmatpush.msra.mxu2 %v42_v19 }
  0x1a   :  { %66 = vmatpush.msra.mxu0 %v41_v21  ;;  %336 = vmatpush.msra.mxu3 %v41_v21 }
  0x1b   :  { %335 = vmatpush.msra.mxu2 %v41_v21  ;;  %v26_v21 = vrot.slane %v428_v20, 4 }
  0x1c   :  { %67 = vmatpush.msra.mxu0 %v40_v22  ;;  %338 = vmatpush.msra.mxu3 %v40_v22 }
  0x1d   :  { %337 = vmatpush.msra.mxu2 %v40_v22 }
  0x1e   :  { %68 = vmatpush.msra.mxu0 %v39_v23  ;;  %340 = vmatpush.msra.mxu3 %v39_v23 }
  0x1f   :  { %339 = vmatpush.msra.mxu2 %v39_v23 }
  0x20   :  { %69 = vmatpush.msra.mxu0 %v38_v24  ;;  %342 = vmatpush.msra.mxu3 %v38_v24 }
  0x21   :  { %70 = vmatmul.f32.vlgmr.msra.gmra.mxu0 %v392_v5  ;;  %85 = vmatmul.f32.vlgmr.msra.gmra.mxu3 %v33_v25 }
  0x22   :  { %341 = vmatpush.msra.mxu2 %v38_v24 }
  0x23   :  { %82 = vmatmul.f32.vlgmr.msra.gmra.mxu2 %v32_v26 }
  0x29   :  { %73 = vmatmul.f32.gmra.mxu0 %v18_v12  ;;  %88 = vmatmul.f32.gmra.mxu3 %v34_v27 }
  0x31   :  { %76 = vmatmul.f32.gmra.mxu0 %v397_v6  ;;  %91 = vmatmul.f32.gmra.mxu3 %v35_v28 }
  0x39   :  { %79 = vmatmul.f32.gmra.mxu0 %v20_v13  ;;  %94 = vmatmul.f32.gmra.mxu3 %v36_v29 }
  0x41   :  { %97 = vmatmul.f32.gmra.mxu3 %v37_v30 }
  0x9e   :  { %v71_v31 = vpop.f32.mrf.mxu0 }
  0xa4   :  { %v86_v32 = vpop.f32.mrf.mxu3 }
  0xa6   :  { %v74_v33 = vpop.f32.mrf.mxu0  ;;  %v83_v40 = vpop.f32.mrf.mxu2 }
  0xa7   :  { %124 = vmatpush.msra.mxu1 %v74_v33  ;;  %v27_v33 = vadd.f32 %v26_v21, %v428_v20 }
  0xa9   :  { %125 = vmatpush.msra.mxu1 %v71_v31 }
  0xaa   :  { %301 = vmatmul.msk.f32.vlgmr.msra.gmra.mxu1 %vm103_vm0, %v101_v34 }
  0xac   :  { %v89_v35 = vpop.f32.mrf.mxu3 }
  0xae   :  { %v77_v36 = vpop.f32.mrf.mxu0 }
  0xb2   :  { %302 = vmatmul.msk.f32.gmra.mxu1 %vm103_vm0, %v102_v37 }
  0xb4   :  { %v92_v38 = vpop.f32.mrf.mxu3 }
  0xb6   :  { %v80_v39 = vpop.f32.mrf.mxu0 }
  0xb7   :  { %147 = vmatpush.msrb.mxu1 %v80_v39  ;;  %343 = vmatpush.msrb.mxu2 %v80_v39 }
  0xb9   :  { %148 = vmatpush.msrb.mxu1 %v77_v36  ;;  %344 = vmatpush.msrb.mxu2 %v77_v36 }
  0xba   :  { %303 = vmatmul.msk.f32.vlgmr.msrb.gmra.mxu1 %vm103_vm0, %v101_v34  ;;  %304 = vmatmul.msk.f32.vlgmr.msrb.gmra.mxu2 %vm103_vm0, %v102_v37 }
  0xbb   :  { %170 = vmatpush.msra.mxu1 %v86_v32 }
  0xbc   :  { %v95_v41 = vpop.f32.mrf.mxu3 }
  0xbd   :  { %171 = vmatpush.msra.mxu1 %v83_v40 }
  0xbf   :  { %193 = vmatpush.msrb.mxu1 %v92_v38 }
  0xc1   :  { %194 = vmatpush.msrb.mxu1 %v89_v35 }
  0xc2   :  { %305 = vmatmul.msk.f32.vlgmr.msra.gmra.mxu1 %vm103_vm0, %v101_v34 }
  0xc4   :  { %v98_v42 = vpop.f32.mrf.mxu3 }
  0xc5   :  { %216 = vmatpush.msra.mxu2 %v98_v42 }
  0xc7   :  { %217 = vmatpush.msra.mxu2 %v95_v41 }
  0xc8   :  { %309 = vmatmul.msk.f32.vlgmr.msra.gmra.mxu2 %vm103_vm0, %v101_v34 }
  0xca   :  { %306 = vmatmul.msk.f32.gmra.mxu1 %vm103_vm0, %v102_v37 }
  0xd0   :  { %310 = vmatmul.msk.f32.gmra.mxu2 %vm103_vm0, %v102_v37 }
  0xd2   :  { %307 = vmatmul.msk.f32.vlgmr.msrb.gmra.mxu1 %vm103_vm0, %v101_v34 }
  0xda   :  { %308 = vmatmul.msk.f32.gmra.mxu1 %vm103_vm0, %v102_v37 }
 0x127   :  { %v127_v43 = vpop.f32.mrf.mxu1 }
 0x128   :  { %v225_v49 = vmul.f32 %v127_v43, %v127_v43 }
 0x12f   :  { %v130_v44 = vpop.f32.mrf.mxu1 }
 0x130   :  { %v226_v61 = vmul.f32 %v130_v44, %v130_v44 }
 0x137   :  { %v150_v45 = vpop.f32.mrf.mxu1 }
 0x138   :  { %v227_v48 = vmul.f32 %v150_v45, %v150_v45  ;;  %v229_v9 = vmul.f32 %v150_v45, %v127_v43 }
 0x13a   :  { %v247_v52 = vadd.f32 %v227_v48, %v225_v49  ;;  %v237_v22 = vmul.f32 2.0, %v229_v9 }
 0x13c   :  { %v249_v56 = vadd.f32 0.0001, %v247_v52  ;;  %v239_v34 = vadd.f32 0.0001, %v237_v22 }
 0x13d   :  { %v153_v50 = vpop.f32.mrf.mxu2 }
 0x13e   :  { %v228_v58 = vmul.f32 %v153_v50, %v153_v50  ;;  %v230_v10 = vmul.f32 %v153_v50, %v130_v44  ;;  %v28_v44 = vrot.slane %v27_v33, 2 }
 0x13f   :  { %v173_v46 = vpop.f32.mrf.mxu1 }
 0x140   :  { %v231_v53 = vsub.f32 %v173_v46, %v225_v49  ;;  %v248_v63 = vadd.f32 %v228_v58, %v226_v61  ;;  %v238_v24 = vmul.f32 2.0, %v230_v10 }
 0x142   :  { %v250_v3 = vadd.f32 0.0001, %v248_v63  ;;  %v240_v36 = vadd.f32 0.0001, %v238_v24 }
 0x147   :  { %v176_v47 = vpop.f32.mrf.mxu1 }
 0x148   :  { %v232_v0 = vsub.f32 %v176_v47, %v226_v61 }
 0x14b   :  { %v219_v59 = vpop.f32.mrf.mxu2 }
 0x14c   :  { %v235_v12 = vsub.f32 %v219_v59, %v229_v9 }
 0x14e   :  { %v241_v16 = vmul.f32 2.0, %v235_v12 }
 0x14f   :  { %v196_v51 = vpop.f32.mrf.mxu1 }
 0x150   :  { %v233_v54 = vsub.f32 %v196_v51, %v227_v48  ;;  %v243_v27 = vadd.f32 0.0009, %v241_v16  ;;  %v29_v48 = vadd.f32 %v28_v44, %v27_v33 }
 0x152   :  { %v251_v55 = vadd.f32 %v233_v54, %v231_v53  ;;  %v245_v40 = vmul.f32 %v243_v27, %v239_v34  ;;  %v30_v50 = vrot.slane %v29_v48, 1 }
 0x153   :  { %v222_v8 = vpop.f32.mrf.mxu2 }
 0x154   :  { %v253_v57 = vadd.f32 0.0009, %v251_v55  ;;  %v236_v13 = vsub.f32 %v222_v8, %v230_v10  ;;  %v31_v53 = vadd.f32 %v30_v50, %v29_v48 }
 0x156   :  { %v255_v60 = vmul.f32 %v253_v57, %v249_v56  ;;  %v242_v17 = vmul.f32 2.0, %v236_v13 }
 0x157   :  { %v199_v62 = vpop.f32.mrf.mxu1 }
 0x158   :  { %345 = vrcp.f32 %v255_v60  ;;  %v234_v1 = vsub.f32 %v199_v62, %v228_v58  ;;  %v268_v23 = vand.u32 2147483648, %v255_v60  ;;  %vm262_vm2 = vweird.f32 %v255_v60 }
 0x159   :  { %v266_v25 = vand.u32 2147483647, %v255_v60  ;;  %v244_v28 = vadd.f32 0.0009, %v242_v17 }
 0x15a   :  { %v252_v2 = vadd.f32 %v234_v1, %v232_v0  ;;  %v269_v35 = vor.u32 1.1754944e-38, %v268_v23 }
 0x15b   :  { %vm267_vm5 = vcmp.eq.f32.partialorder %v266_v25, 8.507059e+37  ;;  %v246_v41 = vmul.f32 %v244_v28, %v240_v36 }
 0x15c   :  { %v254_v4 = vadd.f32 0.0009, %v252_v2 }
 0x15e   :  { %v346_v5 = vpop.eup %345  ;;  %v256_v7 = vmul.f32 %v254_v4, %v250_v3 }
 0x15f   :  { %v258_v6 = vmul.f32 %v346_v5, %v255_v60  ;;  %vm263_vm1 = vweird.f32 %v346_v5 }
 0x160   :  { %347 = vrcp.f32 %v256_v7  ;;  %vm264_vm3 = vmor %vm262_vm2, %vm263_vm1  ;;  %v282_v29 = vand.u32 2147483648, %v256_v7  ;;  %v280_v32 = vand.u32 2147483647, %v256_v7  ;;  %vm276_vm6 = vweird.f32 %v256_v7 }
 0x161   :  { %v259_v11 = vsub.f32 1.0, %v258_v6 }
 0x162   :  { %v283_v39 = vor.u32 1.1754944e-38, %v282_v29  ;;  %vm281_vm8 = vcmp.eq.f32.partialorder %v280_v32, 8.507059e+37 }
 0x163   :  { %v260_v14 = vmul.f32 %v346_v5, %v259_v11 }
 0x165   :  { %v261_v18 = vadd.f32 %v346_v5, %v260_v14 }
 0x166   :  { %v348_v15 = vpop.eup %347 }
 0x167   :  { %v272_v19 = vmul.f32 %v348_v15, %v256_v7  ;;  %v265_v30 = vsel %vm264_vm3, %v346_v5, %v261_v18  ;;  %vm277_vm4 = vweird.f32 %v348_v15 }
 0x168   :  { %v270_v38 = vsel %vm267_vm5, %v269_v35, %v265_v30  ;;  %vm278_vm7 = vmor %vm276_vm6, %vm277_vm4 }
 0x169   :  { %v273_v26 = vsub.f32 1.0, %v272_v19  ;;  %v285_v45 = vmul.f32 %v270_v38, %v245_v40 }
 0x16b   :  { %v274_v31 = vmul.f32 %v348_v15, %v273_v26 }
 0x16d   :  { %v275_v37 = vadd.f32 %v348_v15, %v274_v31 }
 0x16f   :  { %v279_v42 = vsel %vm278_vm7, %v348_v15, %v275_v37 }
 0x170   :  { %v284_v43 = vsel %vm281_vm8, %v283_v39, %v279_v42 }
 0x171   :  { %v286_v46 = vmul.f32 %v284_v43, %v246_v41 }
 0x173   :  { %v287_v47 = vadd.f32 %v286_v46, %v285_v45 }
 0x175   :  { %v288_v20 = vrot.slane %v287_v47, 4 }
 0x177   :  { %v289_v49 = vadd.f32 %v288_v20, %v287_v47 }
 0x179   :  { %v290_v51 = vrot.slane %v289_v49, 2 }
 0x17b   :  { %v291_v52 = vadd.f32 %v290_v51, %v289_v49 }
 0x17d   :  { %v292_v54 = vrot.slane %v291_v52, 1 }
 0x17f   :  { %v293_v55 = vadd.f32 %v292_v54, %v291_v52 }
 0x181   :  { %v295_v56 = vsel %vm294_vm9, %v31_v53, %v293_v55 }
 0x182   :  { %296 = vst [vmem:[%s475_s4] sm:$0x3] %v295_v56 }

</bundles_post_ra>
